<compile_context>
chip_gen: v7x
topology: tpu7x:2x2x1
jax: 0.10.0
libtpu: 0.0.40
codegen_flags: <defaults>
</compile_context>

<pallas_src>
import functools

import jax
import jax.numpy as jnp
from jax.experimental import pallas as pl
from jax.experimental.pallas import tpu as pltpu


def _round_up(x: int, m: int) -> int:
    return (x + m - 1) // m * m


def _choose_tm(m: int) -> int:
    """Row-tile size: multiple of 16 (bf16 sublane tile), <= 1024, preferring
    (a) >= 2 grid steps (v7x has 2 TensorCores sharded over the parallel axis)
    and (b) a divisor of M so no row padding / output slice is needed."""
    if m <= 16:
        return 16
    cap = min(1024, m // 2)            # keep at least 2 grid steps
    cap = max(16, (cap // 16) * 16)    # multiple of 16
    for tm in range(cap, 15, -16):     # largest multiple-of-16 divisor of m
        if m % tm == 0:
            return tm
    return cap                          # no divisor: pad M up to a cap multiple


def patch_embed_kernel(x_ref, w_ref, b_ref, gamma_ref, beta_ref, o_ref, *, e_real):
    # x_ref:     (TM, K)      bf16 flattened patches
    # w_ref:     (K, E_pad)   bf16 projection weight (zero-padded E columns)
    # b_ref:     (1, E_pad)   f32 projection bias    (zero-padded)
    # gamma_ref: (1, E_pad)   f32 LayerNorm weight   (zero-padded)
    # beta_ref:  (1, E_pad)   f32 LayerNorm bias     (zero-padded)
    # o_ref:     (TM, E_pad)  bf16 output
    eps = 1e-5

    # Patch projection on the MXU: bf16 operands, f32 accumulation.
    y = jnp.dot(x_ref[...], w_ref[...], preferred_element_type=jnp.float32)
    y = y + b_ref[...]  # padded E columns stay exactly 0 (W pad = bias pad = 0)

    # LayerNorm over the REAL embedding dim.  Padded columns of y are 0, so
    # row sums over the padded width divided by the real E give exact stats.
    # Single fused reduction pass (sum + sum of squares); clamp the variance
    # against catastrophic cancellation.
    inv_e = 1.0 / e_real
    s1 = jnp.sum(y, axis=-1, keepdims=True)
    s2 = jnp.sum(y * y, axis=-1, keepdims=True)
    mean = s1 * inv_e
    var = jnp.maximum(s2 * inv_e - mean * mean, 0.0)
    inv = jax.lax.rsqrt(var + eps)                  # EUP slot

    scale = inv * gamma_ref[...]                    # (TM,1)*(1,E_pad)
    y_norm = (y - mean) * scale + beta_ref[...]     # padded cols: gamma=beta=0 -> 0

    # SiLU; sigmoid lands on the EUP slot.  Store directly in bf16.
    o_ref[...] = (y_norm * jax.nn.sigmoid(y_norm)).astype(o_ref.dtype)


@functools.partial(jax.jit, static_argnames=("patch_size", "out_dtype"))
def patch_embed(x, conv_w, conv_b, ln_w, ln_b, patch_size, out_dtype=jnp.bfloat16):
    """x: (B, C, H, W) NCHW float32. Returns (B, N, E) in `out_dtype`."""
    B, C, H, W = x.shape
    E = conv_w.shape[0]
    P = patch_size
    assert H % P == 0 and W % P == 0
    Hp, Wp = H // P, W // P
    N = Hp * Wp
    M = B * N
    K = C * P * P

    # --- im2col (single fused XLA pass): cast to bf16 BEFORE the transpose so
    # the copy writes half the bytes; flatten K in (C, kh, kw) order to match
    # nn.Conv2d's weight layout exactly.
    patches = x.astype(jnp.bfloat16).reshape(B, C, Hp, P, Wp, P)
    patches = jnp.transpose(patches, (0, 2, 4, 1, 3, 5)).reshape(M, K)

    # conv weight (E, C, P, P) -> (K, E), bf16 for the MXU.
    w_mat = conv_w.reshape(E, K).T.astype(jnp.bfloat16)

    # --- padding policy ------------------------------------------------------
    #  * E -> multiple of 128 for lane-dense (unmasked) stores; no-op for
    #    standard ViT widths (768/1024/1280).
    #  * K is never padded: every K block spans the full dim.
    #  * M is padded only if no multiple-of-16 tile divides it.
    E_pad = _round_up(E, 128)
    TM = _choose_tm(M)
    M_pad = _round_up(M, TM)

    if M_pad != M:
        patches = jnp.pad(patches, ((0, M_pad - M), (0, 0)))
    if E_pad != E:
        w_mat = jnp.pad(w_mat, ((0, 0), (0, E_pad - E)))
    b_row = jnp.pad(conv_b.astype(jnp.float32).reshape(1, E), ((0, 0), (0, E_pad - E)))
    g_row = jnp.pad(ln_w.astype(jnp.float32).reshape(1, E), ((0, 0), (0, E_pad - E)))
    beta_row = jnp.pad(ln_b.astype(jnp.float32).reshape(1, E), ((0, 0), (0, E_pad - E)))

    grid = (M_pad // TM,)
    out_itemsize = jnp.dtype(out_dtype).itemsize
    cost = pl.CostEstimate(
        flops=2 * M_pad * K * E_pad + 10 * M_pad * E_pad,
        transcendentals=M_pad * E_pad + M_pad,
        bytes_accessed=(M_pad * K * 2            # bf16 patches
                        + K * E_pad * 2          # bf16 weight (resident)
                        + 3 * E_pad * 4          # bias/gamma/beta
                        + M_pad * E_pad * out_itemsize),
    )

    out = pl.pallas_call(
        functools.partial(patch_embed_kernel, e_real=float(E)),
        out_shape=jax.ShapeDtypeStruct((M_pad, E_pad), out_dtype),
        grid_spec=pl.GridSpec(
            grid=grid,
            in_specs=[
                pl.BlockSpec((TM, K), lambda i: (i, 0)),        # patches: tiled over M
                pl.BlockSpec((K, E_pad), lambda i: (0, 0)),     # weight: resident
                pl.BlockSpec((1, E_pad), lambda i: (0, 0)),     # bias: resident
                pl.BlockSpec((1, E_pad), lambda i: (0, 0)),     # gamma: resident
                pl.BlockSpec((1, E_pad), lambda i: (0, 0)),     # beta: resident
            ],
            out_specs=pl.BlockSpec((TM, E_pad), lambda i: (i, 0)),
        ),
        compiler_params=pltpu.CompilerParams(
            dimension_semantics=("parallel",),   # independent M tiles -> 2 TCs on v7x
            vmem_limit_bytes=48 * 1024 * 1024,   # ample for TM=1024 double-buffered
        ),
        cost_estimate=cost,
    )(patches, w_mat, b_row, g_row, beta_row)

    # No-op when TM | M and E % 128 == 0 (the common ViT case).
    out = out[:M, :E]
    return out.reshape(B, N, E)


if __name__ == "__main__":
    # Small, module-consistent shapes.
    B, C, H, W = 2, 4, 16, 16
    P = 4           # patch_size
    E = 32          # embed_dim

    key = jax.random.PRNGKey(0)
    k_x, k_w, k_b, k_g, k_beta = jax.random.split(key, 5)

    x = jax.random.normal(k_x, (B, C, H, W), dtype=jnp.float32)

    # Deterministic parameter init (shapes from nn.Conv2d / nn.LayerNorm).
    conv_w = jax.random.normal(k_w, (E, C, P, P), dtype=jnp.float32) * 0.02
    conv_b = jax.random.normal(k_b, (E,), dtype=jnp.float32) * 0.02
    ln_w = 1.0 + 0.1 * jax.random.normal(k_g, (E,), dtype=jnp.float32)
    ln_b = 0.05 * jax.random.normal(k_beta, (E,), dtype=jnp.float32)

    out = patch_embed(x, conv_w, conv_b, ln_w, ln_b, P)
    out = jax.block_until_ready(out)

    # Pure-JAX reference (conv-as-matmul + layernorm + silu), with the matmul
    # operands routed through bf16 exactly like the kernel's MXU path.
    Hp, Wp = H // P, W // P
    patches_ref = jnp.transpose(
        x.reshape(B, C, Hp, P, Wp, P), (0, 2, 4, 1, 3, 5)
    ).reshape(B * Hp * Wp, C * P * P)
    a = patches_ref.astype(jnp.bfloat16).astype(jnp.float32)
    wm = conv_w.reshape(E, -1).T.astype(jnp.bfloat16).astype(jnp.float32)
    y_ref = a @ wm + conv_b
    mu = y_ref.mean(-1, keepdims=True)
    var = ((y_ref - mu) ** 2).mean(-1, keepdims=True)
    y_ref = (y_ref - mu) / jnp.sqrt(var + 1e-5) * ln_w + ln_b
    y_ref = y_ref * jax.nn.sigmoid(y_ref)
    y_ref = y_ref.reshape(B, -1, E)

    assert out.shape == (B, Hp * Wp, E)
    assert out.dtype == jnp.bfloat16
    # Output is bf16 -> compare with bf16-rounding-sized tolerance.
    assert bool(jnp.allclose(out.astype(jnp.float32), y_ref, atol=2e-2, rtol=2e-2))

    print("KERNEL_OK")
</pallas_src>

<mosaic_0001>
module attributes {stable_mosaic.version = 11 : i64} {
  func.func @patch_embed_kernel(%arg0: i32, %arg1: memref<16x64xbf16, #tpu.memory_space<vmem>>, %arg2: memref<64x128xbf16, #tpu.memory_space<vmem>>, %arg3: memref<1x128xf32, #tpu.memory_space<vmem>>, %arg4: memref<1x128xf32, #tpu.memory_space<vmem>>, %arg5: memref<1x128xf32, #tpu.memory_space<vmem>>, %arg6: memref<16x128xbf16, #tpu.memory_space<vmem>>) attributes {dimension_semantics = [#tpu.dimension_semantics<parallel>], iteration_bounds = array<i64: 2>, scalar_prefetch = 0 : i64, scratch_operands = 0 : i64, tpu.core_type = #tpu.core_type<tc>, window_params = [{transform_indices = @transform_0, window_bounds = array<i64: 16, 64>}, {pipeline_mode = #tpu.pipeline_mode<synchronous>, transform_indices = @transform_1, window_bounds = array<i64: 64, 128>}, {pipeline_mode = #tpu.pipeline_mode<synchronous>, transform_indices = @transform_2, window_bounds = array<i64: 1, 128>}, {pipeline_mode = #tpu.pipeline_mode<synchronous>, transform_indices = @transform_3, window_bounds = array<i64: 1, 128>}, {pipeline_mode = #tpu.pipeline_mode<synchronous>, transform_indices = @transform_4, window_bounds = array<i64: 1, 128>}, {transform_indices = @transform_5, window_bounds = array<i64: 16, 128>}]} {
    %c0 = arith.constant 0 : index
    %c0_0 = arith.constant 0 : index
    %0 = vector.load %arg1[%c0, %c0_0] : memref<16x64xbf16, #tpu.memory_space<vmem>>, vector<16x64xbf16>
    %c0_1 = arith.constant 0 : index
    %c0_2 = arith.constant 0 : index
    %1 = vector.load %arg2[%c0_1, %c0_2] : memref<64x128xbf16, #tpu.memory_space<vmem>>, vector<64x128xbf16>
    %cst = arith.constant dense<0.000000e+00> : vector<16x128xf32>
    %2 = tpu.matmul %0, %1, %cst {dimension_numbers = #tpu.dot_dimension_numbers<[1], [0], [0], [1], [0, 0, 1, 1], [], []>} : vector<16x64xbf16>, vector<64x128xbf16>, vector<16x128xf32> -> vector<16x128xf32>
    %c0_3 = arith.constant 0 : index
    %c0_4 = arith.constant 0 : index
    %3 = vector.load %arg3[%c0_3, %c0_4] : memref<1x128xf32, #tpu.memory_space<vmem>>, vector<1x128xf32>
    %4 = vector.broadcast %3 : vector<1x128xf32> to vector<16x128xf32>
    %5 = arith.addf %2, %4 : vector<16x128xf32>
    %cst_5 = arith.constant dense<0.000000e+00> : vector<16xf32>
    %6 = vector.multi_reduction <add>, %5, %cst_5 [1] : vector<16x128xf32> to vector<16xf32>
    %7 = vector.shape_cast %6 : vector<16xf32> to vector<16x1xf32>
    %8 = arith.mulf %5, %5 : vector<16x128xf32>
    %cst_6 = arith.constant dense<0.000000e+00> : vector<16xf32>
    %9 = vector.multi_reduction <add>, %8, %cst_6 [1] : vector<16x128xf32> to vector<16xf32>
    %10 = vector.shape_cast %9 : vector<16xf32> to vector<16x1xf32>
    %cst_7 = arith.constant 3.125000e-02 : f32
    %11 = vector.broadcast %cst_7 : f32 to vector<16x1xf32>
    %12 = arith.mulf %7, %11 : vector<16x1xf32>
    %cst_8 = arith.constant 3.125000e-02 : f32
    %13 = vector.broadcast %cst_8 : f32 to vector<16x1xf32>
    %14 = arith.mulf %10, %13 : vector<16x1xf32>
    %15 = arith.mulf %12, %12 : vector<16x1xf32>
    %16 = arith.subf %14, %15 : vector<16x1xf32>
    %cst_9 = arith.constant 0.000000e+00 : f32
    %17 = vector.broadcast %cst_9 : f32 to vector<16x1xf32>
    %18 = arith.maximumf %16, %17 : vector<16x1xf32>
    %cst_10 = arith.constant 9.99999974E-6 : f32
    %19 = vector.broadcast %cst_10 : f32 to vector<16x1xf32>
    %20 = arith.addf %18, %19 : vector<16x1xf32>
    %21 = math.rsqrt %20 : vector<16x1xf32>
    %c0_11 = arith.constant 0 : index
    %c0_12 = arith.constant 0 : index
    %22 = vector.load %arg4[%c0_11, %c0_12] : memref<1x128xf32, #tpu.memory_space<vmem>>, vector<1x128xf32>
    %23 = vector.broadcast %21 : vector<16x1xf32> to vector<16x128xf32>
    %24 = vector.broadcast %22 : vector<1x128xf32> to vector<16x128xf32>
    %25 = arith.mulf %23, %24 : vector<16x128xf32>
    %26 = vector.broadcast %12 : vector<16x1xf32> to vector<16x128xf32>
    %27 = arith.subf %5, %26 : vector<16x128xf32>
    %28 = arith.mulf %27, %25 : vector<16x128xf32>
    %c0_13 = arith.constant 0 : index
    %c0_14 = arith.constant 0 : index
    %29 = vector.load %arg5[%c0_13, %c0_14] : memref<1x128xf32, #tpu.memory_space<vmem>>, vector<1x128xf32>
    %30 = vector.broadcast %29 : vector<1x128xf32> to vector<16x128xf32>
    %31 = arith.addf %28, %30 : vector<16x128xf32>
    %32 = arith.negf %31 : vector<16x128xf32>
    %33 = math.exp %32 : vector<16x128xf32>
    %cst_15 = arith.constant 1.000000e+00 : f32
    %34 = vector.broadcast %cst_15 : f32 to vector<16x128xf32>
    %35 = arith.addf %34, %33 : vector<16x128xf32>
    %36 = arith.divf %34, %35 : vector<16x128xf32>
    %37 = arith.mulf %31, %36 : vector<16x128xf32>
    %38 = arith.truncf %37 : vector<16x128xf32> to vector<16x128xbf16>
    %c0_16 = arith.constant 0 : index
    %c0_17 = arith.constant 0 : index
    %39 = vector.load %arg6[%c0_16, %c0_17] : memref<16x128xbf16, #tpu.memory_space<vmem>>, vector<16x128xbf16>
    tpu.vector_store %arg6[%c0_16, %c0_17], %38 {strides = array<i32>} : memref<16x128xbf16, #tpu.memory_space<vmem>>, vector<16x128xbf16>,
    return
  }
  func.func @transform_0(%arg0: i32) -> (i32, i32) {
    %c0_i32 = arith.constant 0 : i32
    %c0_i32_0 = arith.constant 0 : i32
    return %arg0, %c0_i32 : i32, i32
  }
  func.func @transform_1(%arg0: i32) -> (i32, i32) {
    %c0_i32 = arith.constant 0 : i32
    %c0_i32_0 = arith.constant 0 : i32
    %c0_i32_1 = arith.constant 0 : i32
    return %c0_i32, %c0_i32_0 : i32, i32
  }
  func.func @transform_2(%arg0: i32) -> (i32, i32) {
    %c0_i32 = arith.constant 0 : i32
    %c0_i32_0 = arith.constant 0 : i32
    %c0_i32_1 = arith.constant 0 : i32
    return %c0_i32, %c0_i32_0 : i32, i32
  }
  func.func @transform_3(%arg0: i32) -> (i32, i32) {
    %c0_i32 = arith.constant 0 : i32
    %c0_i32_0 = arith.constant 0 : i32
    %c0_i32_1 = arith.constant 0 : i32
    return %c0_i32, %c0_i32_0 : i32, i32
  }
  func.func @transform_4(%arg0: i32) -> (i32, i32) {
    %c0_i32 = arith.constant 0 : i32
    %c0_i32_0 = arith.constant 0 : i32
    %c0_i32_1 = arith.constant 0 : i32
    return %c0_i32, %c0_i32_0 : i32, i32
  }
  func.func @transform_5(%arg0: i32) -> (i32, i32) {
    %c0_i32 = arith.constant 0 : i32
    %c0_i32_0 = arith.constant 0 : i32
    return %arg0, %c0_i32 : i32, i32
  }
}

</mosaic_0001>

<bundles_post_ra>
// kernel: patch_embed.1
= control target key start
LH: loop header
LB: loop body
LE: loop exit
PB: predicated region body
PF: predicated region fallthrough
CT: control target
= control target key end

     0   :  { %10 = vsyncpa [#allocation3], 0  ;;  %s796_s0 = inlined_call_operand.vmem [shape: bf16[32,64], index: 0, kind: input, shape index: {}]   ;;  %s797_s1 = inlined_call_operand.vmem [shape: bf16[64,128], index: 1, kind: input, shape index: {}]   ;;  %s798_s2 = inlined_call_operand.vmem [shape: f32[1,128], index: 2, kind: input, shape index: {}]   ;;  %s799_s3 = inlined_call_operand.vmem [shape: f32[1,128], index: 3, kind: input, shape index: {}]   ;;  %s800_s4 = inlined_call_operand.vmem [shape: f32[1,128], index: 4, kind: input, shape index: {}]   ;;  %s801_s5 = inlined_call_operand.hbm [shape: bf16[32,128], index: 5, kind: output, shape index: {}]  }
   0x1   :  { %12 = vsyncpa [#allocation3 + $0x1], 0  ;;  %s673_s18 = smov 0   ;;  %s675_s19 = smov 0  }
   0x2   :  { %s677_s20 = smov 0   ;;  %s679_s21 = smov 0  }
   0x3 LB: > { %s694_s22 = sadd.s32 4294967295, %s636_s21   ;;  %s464_s23 = sadd.s32 4294967294, %s636_s21   ;;  %s636_s21 = sphi %s679_s21, %s807_s21   ;;  %s632_s20 = sphi %s677_s20, %s806_s20   ;;  %s628_s19 = sphi %s675_s19, %s805_s19   ;;  %s624_s18 = sphi %s673_s18, %s804_s18  }
   0x4   : > { %s698_s24 = sadd.s32 1, %s636_s21   ;;  %s135_s25 = sadd.s32 1, %s632_s20 }
   0x5   : > { %s132_s26 = ssub.s32 %s636_s21, %s698_s24  ;;  %p145_p0 = scmp.ne.s32.totalorder %s632_s20, %s628_s19 }
   0x6   : > { %p133_p1 = scmp.eq.s32.totalorder %s132_s26, 0  ;;  %p146_p2 = scmp.eq.s32.totalorder %s694_s22, 1 }
   0x7   : > { %p151_p3 = scmp.ne.s32.totalorder %s628_s19, %s624_s18  ;;  %p152_p4 = scmp.eq.s32.totalorder %s464_s23, 1 }
   0x8   : > { %s709_s27 = scalar_select %p133_p1, %s632_s20, %s135_s25  }
   0x9   : > { %p711_p5 = por %p146_p2, %p145_p0  ;;  %p715_p6 = por %p152_p4, %p151_p3 }
   0xa   : > { %p467_p7 = scmp.ge.s32.totalorder %s636_s21, 1  ;;  %p191_p8 = scmp.lt.s32.totalorder %s636_s21, 3 }
   0xc   : > { %p192_p9 = pnand %p467_p7, %p191_p8 }
   0xd   : > { %v557_v0 = vld [vmem:[%s797_s1] sm:$0xff] (!%p192_p9)   ;;  %v638_v1 = vmov (!%p192_p9), 0.0   ;;  %v558_v2 = vld [vmem:[%s797_s1 + $0x8] sm:$0xff] (!%p192_p9)   ;;  %vm639_vm0 = vmmov (!%p192_p9), 0   ;;  %s469_s9 = sshll.u32 (!%p192_p9), %s694_s22, 1  ;;  %v559_v3 = vld [vmem:[%s797_s1 + $0x10] sm:$0xff] (!%p192_p9)  }
   0xe   : > { %195 = sbr.rel (%p192_p9) target bundleno = 462 (0x1ce), region = 40  ;;  %502 = vmatprep.subr.bf16.mxu0 (!%p192_p9), %v638_v1  ;;  %510 = vmatprep.mubr.msk.bf16.mxu0 (!%p192_p9), %vm639_vm0, %v638_v1  ;;  %p220_p10 = scmp.lt.s32.totalorder (!%p192_p9), %s469_s9, 3  ;;  %v560_v4 = vld [vmem:[%s797_s1 + $0x18] sm:$0xff] (!%p192_p9)   ;;  %vm273_vm1 = vcmask (!%p192_p9), 523264   ;;  %v471_v6 = vld [vmem:[%s798_s2] ss:$0 sm:$0xff] (!%p192_p9) }
   0xf   : > { %503 = vmatpush3.bf16.msra.mxu0 (!%p192_p9), %v557_v0  ;;  %v478_v31 = vld [vmem:[%s799_s3] ss:$0 sm:$0xff] (!%p192_p9)  ;;  %s216_s8 = sand.u32 (!%p192_p9), 1, %s628_s19   ;;  %s491_s10 = sshll.u32 (!%p192_p9), %s694_s22, 7 }
  0x10   : > { %504 = vmatprep.subr.bf16.mxu0 (!%p192_p9), %v638_v1  ;;  %v479_v35 = vld [vmem:[%s800_s4] ss:$0 sm:$0xff] (!%p192_p9)  ;;  %s755_s16 = scalar_lea.sflag (!%p192_p9), [#allocation3], %s216_s8  ;;  %s640_s17 = smov (!%p192_p9), [#allocation2]  }
  0x11   : > { %s578_s23 = sshll.u32 (!%p192_p9), %s640_s17, 4  ;;  %s579_s23 = int_to_ptr.vmem [resolvable:$false] %s578_s23 }
  0x12   : > { %s580_s25 = scalar_lea.vmem (!%p192_p9), %s579_s23, 256 }
  0x13   : > { %505 = vmatpush3.bf16.msra.mxu0 (!%p192_p9), %v558_v2 }
  0x14   : > { %506 = vmatprep.subr.bf16.mxu0 (!%p192_p9), %v638_v1 }
  0x15   : > { %s809_s9 = smov (!%p220_p10, %s469_s9), 3 }
  0x16   : > { %s470_s12 = sshll.u32 %s809_s9, 2  ;;  %s468_s9 = sshll.u32 %s216_s8, 3 }
  0x17   : > { %s223_s15 = scalar_lea.vmem %s796_s0, %s470_s12  ;;  %507 = vmatpush3.bf16.msra.mxu0 %v559_v3  ;;  %s218_s11 = scalar_lea.vmem [#allocation2], %s468_s9 }
  0x18   : > { %508 = vmatprep.subr.bf16.mxu0 %v638_v1  ;;  %v561_v5 = vld [vmem:[%s223_s15] sm:$0xff]   ;;  %s402_s12 = sshll.u32 %s218_s11, 4  ;;  %s751_s15 = scalar_lea.hbm %s801_s5, %s491_s10  ;;  %s753_s12 = int_to_ptr.vmem [resolvable:$true] %s402_s12 }
  0x19   : > { %s574_s22 = scalar_lea.vmem %s753_s12, 128  ;;  %p581_p0 = scmp.lt.s32.totalorder %s753_s12, %s579_s23 }
  0x1a   : > { %p575_p11 = scmp.ne.s32.totalorder %s753_s12, %s574_s22  ;;  %p582_p1 = scmp.lt.s32.totalorder %s580_s25, %s574_s22 }
  0x1b   : > { %509 = vmatpush3.bf16.msra.mxu0 %v560_v4 }
  0x1c   : > { %p576_p12 = pnand %p575_p11, %p711_p5  ;;  %p583_p2 = por %p582_p1, %p581_p0 }
  0x1e   : > { %511 = vmatmul.mubr.msk.bf16.vlgmr.msra.gmra.mrb[0].mxu0 %vm273_vm1, %v561_v5  ;;  %p577_p13 = pneg %p576_p12 }
  0x20   : > { %p584_p3 = pnand %p583_p2, %p577_p13 }
  0xf1   : > { %v311_v7 = vpop.f32.mrb[0].mxu0 }
  0xf2   : > { %v312_v8 = vadd.f32 %v471_v6, %v311_v7  ;;  %v512_v9 = vpop.f32.mrb[1].mxu0 }
  0xf3   : > { %v314_v10 = vpop.f32.mrb[2].mxu0 }
  0xf4   : > { %v315_v11 = vadd.f32 %v471_v6, %v314_v10  ;;  %318 = vadd.xlane.f32.xlu0 %v312_v8  ;;  %v513_v12 = vpop.f32.mrb[3].mxu0  ;;  %v322_v13 = vmul.f32 %v312_v8, %v312_v8 }
  0xf6   : > { %324 = vadd.xlane.f32.xlu1 %v322_v13  ;;  %v323_v14 = vmul.f32 %v315_v11, %v315_v11 }
  0xf8   : > { %320 = vadd.xlane.f32.xlu0 %v315_v11 }
  0xfa   : > { %326 = vadd.xlane.f32.xlu1 %v323_v14 }
 0x181   : > { %v319_v15 = vpop.xlane.xlu0 %318 }
 0x182   : > { %v328_v16 = vmul.f32 0.03125, %v319_v15 }
 0x183   : > { %v325_v17 = vpop.xlane.xlu1 %324 }
 0x184   : > { %v332_v18 = vmul.f32 %v328_v16, %v328_v16  ;;  %v330_v19 = vmul.f32 0.03125, %v325_v17  ;;  %v351_v33 = vsub.f32 %v312_v8, %v328_v16 }
 0x185   : > { %v321_v20 = vpop.xlane.xlu0 %320 }
 0x186   : > { %v334_v21 = vsub.f32 %v330_v19, %v332_v18  ;;  %v329_v22 = vmul.f32 0.03125, %v321_v20 }
 0x187   : > { %v327_v23 = vpop.xlane.xlu1 %326 }
 0x188   : > { %v336_v24 = vmax.f32 %v334_v21, 0.0  ;;  %v333_v25 = vmul.f32 %v329_v22, %v329_v22  ;;  %v331_v26 = vmul.f32 0.03125, %v327_v23  ;;  %v352_v38 = vsub.f32 %v315_v11, %v329_v22 }
 0x18a   : > { %v338_v27 = vadd.f32 1e-05, %v336_v24  ;;  %v335_v28 = vsub.f32 %v331_v26, %v333_v25 }
 0x18c   : > { %562 = vrsqrt.f32 %v338_v27  ;;  %v337_v29 = vmax.f32 %v335_v28, 0.0 }
 0x18e   : > { %v339_v30 = vadd.f32 1e-05, %v337_v29 }
 0x190   : > { %564 = vrsqrt.f32 %v339_v30 }
 0x196   : > { %v563_v32 = vpop.eup %562 }
 0x197   : > { %v349_v34 = vmul.f32 %v563_v32, %v478_v31 }
 0x199   : > { %v353_v36 = vmul.f32 %v351_v33, %v349_v34 }
 0x19a   : > { %v565_v37 = vpop.eup %564 }
 0x19b   : > { %v350_v39 = vmul.f32 %v565_v37, %v478_v31  ;;  %v362_v40 = vadd.f32 %v479_v35, %v353_v36 }
 0x19d   : > { %v354_v41 = vmul.f32 %v352_v38, %v350_v39  ;;  %v480_v42 = vmul.f32 -1.442695, %v362_v40 }
 0x19f   : > { %v363_v43 = vadd.f32 %v479_v35, %v354_v41  ;;  %566 = vpow2.f32 %v480_v42 }
 0x1a1   : > { %v481_v44 = vmul.f32 -1.442695, %v363_v43 }
 0x1a3   : > { %568 = vpow2.f32 %v481_v44 }
 0x1a9   : > { %v567_v45 = vpop.eup %566 }
 0x1aa   : > { %v370_v46 = vadd.f32 1.0, %v567_v45 }
 0x1ac   : > { %570 = vrcp.f32 %v370_v46 }
 0x1ad   : > { %v569_v47 = vpop.eup %568 }
 0x1ae   : > { %v371_v48 = vadd.f32 1.0, %v569_v47 }
 0x1b0   : > { %572 = vrcp.f32 %v371_v48 }
 0x1b6   : > { %v571_v49 = vpop.eup %570 }
 0x1b7   : > { %v376_v51 = vmul.f32 %v571_v49, %v362_v40 }
 0x1ba   : > { %v573_v50 = vpop.eup %572 }
 0x1bb   : > { %v377_v52 = vmul.f32 %v573_v50, %v363_v43 }
 0x1bd   : > { %v495_v53 = vpack.c.bf16 %v377_v52, %v376_v51 }
 0x1bf   : > { %496 = vst [vmem:[%s218_s11] sm:$0xff] %v495_v53  }
 0x1c0   : > { %587 = shalt.err (!%p584_p3)
}
 0x1c1   : > { %s588_s26 = scalar_lea.hbm %s751_s15, 128  ;;  %s592_s7 = scalar_lea.hbm %s801_s5, 256 }
 0x1c2   : > { %p589_p4 = scmp.ne.s32.totalorder %s751_s15, %s588_s26  ;;  %p593_p9 = scmp.lt.u32.totalorder %s751_s15, %s801_s5 }
 0x1c3   : > { %p594_p10 = scmp.lt.u32.totalorder %s592_s7, %s588_s26  ;;  %p596_p12 = scmp.lt.u32.totalorder %s588_s26, %s751_s15 }
 0x1c4   : > { %p590_p7 = pnand %p589_p4, %p711_p5 }
 0x1c5   : > { %p595_p11 = por %p594_p10, %p593_p9 }
 0x1c6   : > { %p591_p8 = pneg %p590_p7 }
 0x1c7   : > { %p597_p13 = por %p596_p12, %p595_p11 }
 0x1c9   : > { %p598_p0 = pnand %p597_p13, %p591_p8 }
 0x1cb   : > { %601 = shalt.err (!%p598_p0)
}
 0x1cc   : > { %s641_s10 = smov 64   ;;  %s642_s11 = smov 4  }
 0x1cd   : > { %514 = dma.vmem_to_hbm [thread:$0]  (%p711_p5), %s753_s12, 128, %s751_s15, %s755_s16, %s641_s10, %s641_s10, %s642_s11  }
 0x1ce PF: > { %p520_p1 = scmp.ge.s32.totalorder %s636_s21, 2  ;;  %s417_s13 = sand.u32 1, %s624_s18  }
 0x1cf   : > { %s418_s14 = scalar_lea.sflag [#allocation3], %s417_s13 }
 0x1d0   : > { %p517_p2 = pnand %p520_p1, %p715_p6 }
 0x1d2   : > { %619 = dma.done.wait (!%p517_p2), %s418_s14, 128  }
 0x1d3   : > { %621 = vsyncadd (!%p517_p2), %s418_s14, 4294967168  ;;  %p15_p3 = scmp.ge.s32.totalorder %s698_s24, 4   ;;  %s804_s18 = smov %s628_s19 }
 0x1d4   : > { %s805_s19 = smov %s632_s20  ;;  %s806_s20 = smov %s709_s27 }
 0x1d5   : > { %s807_s21 = smov %s698_s24  ;;  %17 = sbr.rel (!%p15_p3) target bundleno = 3 (0x3), region = 75 }
 0x1dc   :  { %423 = vsyncpa [#allocation3], 1 }
 0x1dd   :  { %425 = vsyncpa [#allocation3 + $0x1], 1 }

</bundles_post_ra>
